<compile_context>
chip_gen: v7x
topology: tpu7x:2x2x1
jax: 0.10.0
libtpu: 0.0.40
codegen_flags: <defaults>
</compile_context>

<pallas_src>
import jax
import jax.numpy as jnp
from jax.experimental import pallas as pl
from jax.experimental.pallas import tpu as pltpu


def _cdiv(a, b):
    return (a + b - 1) // b


def _round_up(x, m):
    return _cdiv(x, m) * m


def _fit_tile(dim, tile, granule):
    """Pick a tile (multiple of `granule`, <= ~tile) dividing a minimally padded dim."""
    if dim <= tile:
        t = _round_up(dim, granule)
        return t, t
    n = _cdiv(dim, tile)
    t = _round_up(_cdiv(dim, n), granule)
    return t, n * t


def _vmem_cap_bytes():
    try:
        return int(pltpu.get_tpu_info().vmem_capacity_bytes)
    except Exception:
        return 64 * 1024 * 1024  # conservative fallback: v7x per-TensorCore VMEM


# ----------------------------- kernels --------------------------------------


def _encode_kernel_2d(x_ref, w_ref, b_ref, o_ref):
    # Full d_in strip resident in VMEM: one MXU pass + fused bias/ReLU epilogue.
    z = jnp.dot(x_ref[...], w_ref[...], preferred_element_type=jnp.float32)
    o_ref[...] = jnp.maximum(z + b_ref[...], 0.0).astype(o_ref.dtype)


def _encode_kernel_3d_inplace(x_ref, w_ref, b_ref, o_ref):
    # f32 output block is resident across the K axis -> accumulate into it directly.
    k = pl.program_id(2)
    part = jnp.dot(x_ref[...], w_ref[...], preferred_element_type=jnp.float32)

    @pl.when(k == 0)
    def _():
        o_ref[...] = part          # no zero-init store

    @pl.when(k > 0)
    def _():
        o_ref[...] += part

    @pl.when(k == pl.num_programs(2) - 1)
    def _():
        o_ref[...] = jnp.maximum(o_ref[...] + b_ref[...], 0.0)


def _encode_kernel_3d_scratch(x_ref, w_ref, b_ref, o_ref, acc_ref):
    # Narrow output dtype: accumulate in f32 scratch, narrow only on the last K step.
    k = pl.program_id(2)
    part = jnp.dot(x_ref[...], w_ref[...], preferred_element_type=jnp.float32)

    @pl.when(k == 0)
    def _():
        acc_ref[...] = part

    @pl.when(k > 0)
    def _():
        acc_ref[...] += part

    @pl.when(k == pl.num_programs(2) - 1)
    def _():
        o_ref[...] = jnp.maximum(acc_ref[...] + b_ref[...], 0.0).astype(o_ref.dtype)


# ----------------------------- wrapper ---------------------------------------


def prepare_sae_encoder(w_enc, b_enc, compute_dtype=jnp.float32):
    """One-time prep of the static encoder params (cache the result across calls).

    w_enc: (d_sae, d_in) nn.Linear layout -> returned transposed (d_in, d_sae)
           in the MXU compute dtype; bias stays f32 (bias add + ReLU are f32).
    """
    w_t = jnp.asarray(w_enc).T.astype(compute_dtype)        # (d_in, d_sae)
    b2d = jnp.asarray(b_enc, jnp.float32).reshape(1, -1)    # (1, d_sae)
    return w_t, b2d


def sae_forward(x, w_enc=None, b_enc=None, *, prepared=None,
                tile_b=512, tile_n=1024, tile_k=1024,
                compute_dtype=jnp.float32, out_dtype=jnp.float32,
                two_d=None):
    """feature_acts = relu(x @ W_enc.T + b_enc) as a tiled Pallas TPU kernel.

    compute_dtype=float32 (default) matches the PyTorch .float() forward exactly;
    pass jnp.bfloat16 for the fast MXU path (f32 accumulation, f32 bias+ReLU).
    `prepared` = prepare_sae_encoder(...) output, so the static weight
    transpose/cast is paid once, not per call.  two_d: None=auto, True/False force.
    """
    if prepared is None:
        prepared = prepare_sae_encoder(w_enc, b_enc, compute_dtype)
    w_t, b2d = prepared
    w_t = w_t.astype(compute_dtype)
    d_in, d_sae = w_t.shape

    x = jnp.asarray(x)
    N, d_in_x = x.shape
    assert d_in_x == d_in, "x / W_enc d_in mismatch"

    cbytes = jnp.dtype(compute_dtype).itemsize
    obytes = jnp.dtype(out_dtype).itemsize

    # Tile / minimal-padding plan (batch granule 8, lane granule 128).
    TB, Np = _fit_tile(N, tile_b, 8)
    TN, Sp = _fit_tile(d_sae, tile_n, 128)
    nb, nj = Np // TB, Sp // TN
    # If the parallel grid collapses to a single output tile, split d_sae so
    # 2-TensorCore chips (v7x) can still shard the grid across cores.
    if nb * nj < 2 and d_sae > 128:
        TN, Sp = _fit_tile(d_sae, max(128, (TN // 2) // 128 * 128), 128)
        nj = Sp // TN

    cap = _vmem_cap_bytes()
    budget = int(cap * 0.75)          # headroom for Mosaic internal scratch

    Kp_full = _round_up(d_in, 128)
    foot_2d = (2 * (TB + TN) * Kp_full * cbytes
               + 2 * TB * TN * obytes + 2 * 8 * TN * 4)
    use_2d = (foot_2d <= int(cap * 0.6)) if two_d is None else bool(two_d)

    if use_2d:
        TK, Kp = Kp_full, Kp_full
        nk = 1
    else:
        TK, Kp = _fit_tile(d_in, tile_k, 128)
        nk = Kp // TK

    # Cast once directly to the compute dtype, pad only if actually needed
    # (zero-padding is exact for the matmul; padded rows/cols sliced off).
    x_c = x.astype(compute_dtype)
    if (Np, Kp) != (N, d_in):
        x_c = jnp.pad(x_c, ((0, Np - N), (0, Kp - d_in)))
    w_c = w_t
    if (Kp, Sp) != (d_in, d_sae):
        w_c = jnp.pad(w_c, ((0, Kp - d_in), (0, Sp - d_sae)))
    b_c = b2d
    if Sp != d_sae:
        b_c = jnp.pad(b_c, ((0, 0), (0, Sp - d_sae)))

    need_scratch = (not use_2d) and (jnp.dtype(out_dtype) != jnp.dtype(jnp.float32))
    foot = (2 * (TB * TK + TK * TN) * cbytes
            + 2 * TB * TN * obytes + 2 * 8 * TN * 4
            + (TB * TN * 4 if need_scratch else 0))
    vmem_limit = min(budget, max(int(foot * 1.25) + (4 << 20), 16 << 20))

    cost = pl.CostEstimate(
        flops=2 * Np * Kp * Sp,
        transcendentals=0,
        bytes_accessed=(Np * Kp * cbytes + Kp * Sp * cbytes
                        + Sp * 4 + Np * Sp * obytes),
    )

    if use_2d:
        grid = (nb, nj)
        in_specs = [
            pl.BlockSpec((TB, Kp), lambda i, j: (i, 0)),   # x strip: resident across j
            pl.BlockSpec((Kp, TN), lambda i, j: (0, j)),   # pre-transposed weight panel
            pl.BlockSpec((1, TN), lambda i, j: (0, j)),    # bias
        ]
        out_spec = pl.BlockSpec((TB, TN), lambda i, j: (i, j))
        kernel = _encode_kernel_2d
        scratch = []
        dims = ("parallel", "parallel")
    else:
        grid = (nb, nj, nk)
        in_specs = [
            pl.BlockSpec((TB, TK), lambda i, j, k: (i, k)),
            pl.BlockSpec((TK, TN), lambda i, j, k: (k, j)),
            pl.BlockSpec((1, TN), lambda i, j, k: (0, j)),
        ]
        out_spec = pl.BlockSpec((TB, TN), lambda i, j, k: (i, j))
        if need_scratch:
            kernel = _encode_kernel_3d_scratch
            scratch = [pltpu.VMEM((TB, TN), jnp.float32)]
        else:
            kernel = _encode_kernel_3d_inplace
            scratch = []
        dims = ("parallel", "parallel", "arbitrary")

    out = pl.pallas_call(
        kernel,
        out_shape=jax.ShapeDtypeStruct((Np, Sp), out_dtype),
        grid_spec=pltpu.PrefetchScalarGridSpec(
            num_scalar_prefetch=0,
            grid=grid,
            in_specs=in_specs,
            out_specs=out_spec,
            scratch_shapes=scratch,
        ),
        compiler_params=pltpu.CompilerParams(
            dimension_semantics=dims,
            vmem_limit_bytes=vmem_limit,
        ),
        cost_estimate=cost,
    )(x_c, w_c, b_c)

    if (Np, Sp) != (N, d_sae):
        out = out[:N, :d_sae]
    return out


# ----------------------------- demo / checks ---------------------------------


if __name__ == "__main__":
    key = jax.random.PRNGKey(0)
    kx, kw, kb, kdw, kdb = jax.random.split(key, 5)

    N, d_in, d_sae = 128, 256, 384
    x = jax.random.normal(kx, (N, d_in), dtype=jnp.float32)
    w_enc = jax.random.normal(kw, (d_sae, d_in), dtype=jnp.float32) * 0.05
    b_enc = jax.random.normal(kb, (d_sae,), dtype=jnp.float32) * 0.05
    # TODO(synk): decoder params exist in SimpleSAE.__init__ but forward() never
    # uses them, so they are not part of the kernel.
    w_dec = jax.random.normal(kdw, (d_in, d_sae), dtype=jnp.float32) * 0.05  # noqa: F841
    b_dec = jax.random.normal(kdb, (d_in,), dtype=jnp.float32) * 0.05        # noqa: F841

    ref = jnp.maximum(x @ w_enc.T + b_enc, 0.0)

    # 1) Default exact-f32 path (matches the PyTorch .float() forward);
    #    auto-selects the 2-D grid with the x strip resident across d_sae tiles.
    prepared_f32 = prepare_sae_encoder(w_enc, b_enc, jnp.float32)  # cache once
    out_f32 = sae_forward(x, prepared=prepared_f32)
    jax.block_until_ready(out_f32)
    assert out_f32.shape == (N, d_sae)
    assert jnp.allclose(out_f32, ref, atol=1e-4, rtol=1e-4)

    # 2) bf16-MXU / f32-out fast path, forced 3-D reduction grid, ragged batch
    #    (100 rows -> 56-row tiles) — exercises the in-place o_ref accumulator.
    prepared_bf16 = prepare_sae_encoder(w_enc, b_enc, jnp.bfloat16)
    out_bf16 = sae_forward(x[:100], prepared=prepared_bf16,
                           tile_b=64, tile_n=128, tile_k=128,
                           compute_dtype=jnp.bfloat16, out_dtype=jnp.float32,
                           two_d=False)
    jax.block_until_ready(out_bf16)
    assert out_bf16.shape == (100, d_sae)
    assert jnp.max(jnp.abs(out_bf16 - ref[:100])) < 5e-2

    # 3) bf16 output (halves writeback bytes) — exercises the f32 scratch
    #    accumulator path of the 3-D grid.
    out_bf16o = sae_forward(x[:100], prepared=prepared_bf16,
                            tile_b=64, tile_n=128, tile_k=128,
                            compute_dtype=jnp.bfloat16, out_dtype=jnp.bfloat16,
                            two_d=False)
    jax.block_until_ready(out_bf16o)
    assert out_bf16o.shape == (100, d_sae)
    assert jnp.max(jnp.abs(out_bf16o.astype(jnp.float32) - ref[:100])) < 5e-2

    print("KERNEL_OK")
</pallas_src>

<mosaic_0001>
module attributes {stable_mosaic.version = 11 : i64} {
  func.func @_encode_kernel_2d(%arg0: i32, %arg1: i32, %arg2: memref<128x256xf32, #tpu.memory_space<vmem>>, %arg3: memref<256x128xf32, #tpu.memory_space<vmem>>, %arg4: memref<1x128xf32, #tpu.memory_space<vmem>>, %arg5: memref<128x128xf32, #tpu.memory_space<vmem>>) attributes {dimension_semantics = [#tpu.dimension_semantics<parallel>, #tpu.dimension_semantics<parallel>], iteration_bounds = array<i64: 1, 3>, scalar_prefetch = 0 : i64, scratch_operands = 0 : i64, tpu.core_type = #tpu.core_type<tc>, window_params = [{transform_indices = @transform_0, window_bounds = array<i64: 128, 256>}, {transform_indices = @transform_1, window_bounds = array<i64: 256, 128>}, {transform_indices = @transform_2, window_bounds = array<i64: 1, 128>}, {transform_indices = @transform_3, window_bounds = array<i64: 128, 128>}]} {
    %c0 = arith.constant 0 : index
    %c0_0 = arith.constant 0 : index
    %0 = vector.load %arg2[%c0, %c0_0] : memref<128x256xf32, #tpu.memory_space<vmem>>, vector<128x256xf32>
    %c0_1 = arith.constant 0 : index
    %c0_2 = arith.constant 0 : index
    %1 = vector.load %arg3[%c0_1, %c0_2] : memref<256x128xf32, #tpu.memory_space<vmem>>, vector<256x128xf32>
    %cst = arith.constant dense<0.000000e+00> : vector<128x128xf32>
    %2 = tpu.matmul %0, %1, %cst {dimension_numbers = #tpu.dot_dimension_numbers<[1], [0], [0], [1], [0, 0, 1, 1], [], []>} : vector<128x256xf32>, vector<256x128xf32>, vector<128x128xf32> -> vector<128x128xf32>
    %c0_3 = arith.constant 0 : index
    %c0_4 = arith.constant 0 : index
    %3 = vector.load %arg4[%c0_3, %c0_4] : memref<1x128xf32, #tpu.memory_space<vmem>>, vector<1x128xf32>
    %4 = vector.broadcast %3 : vector<1x128xf32> to vector<128x128xf32>
    %5 = arith.addf %2, %4 : vector<128x128xf32>
    %cst_5 = arith.constant 0.000000e+00 : f32
    %6 = vector.broadcast %cst_5 : f32 to vector<128x128xf32>
    %7 = arith.maximumf %5, %6 : vector<128x128xf32>
    %c0_6 = arith.constant 0 : index
    %c0_7 = arith.constant 0 : index
    %8 = vector.load %arg5[%c0_6, %c0_7] : memref<128x128xf32, #tpu.memory_space<vmem>>, vector<128x128xf32>
    tpu.vector_store %arg5[%c0_6, %c0_7], %7 {strides = array<i32>} : memref<128x128xf32, #tpu.memory_space<vmem>>, vector<128x128xf32>,
    return
  }
  func.func @transform_0(%arg0: i32, %arg1: i32) -> (i32, i32) {
    %c0_i32 = arith.constant 0 : i32
    %c0_i32_0 = arith.constant 0 : i32
    return %arg0, %c0_i32 : i32, i32
  }
  func.func @transform_1(%arg0: i32, %arg1: i32) -> (i32, i32) {
    %c0_i32 = arith.constant 0 : i32
    %c0_i32_0 = arith.constant 0 : i32
    return %c0_i32, %arg1 : i32, i32
  }
  func.func @transform_2(%arg0: i32, %arg1: i32) -> (i32, i32) {
    %c0_i32 = arith.constant 0 : i32
    %c0_i32_0 = arith.constant 0 : i32
    return %c0_i32, %arg1 : i32, i32
  }
  func.func @transform_3(%arg0: i32, %arg1: i32) -> (i32, i32) {
    %c0_i32 = arith.constant 0 : i32
    return %arg0, %arg1 : i32, i32
  }
}

</mosaic_0001>

<bundles_post_ra>
// kernel: tpu_custom_call.1
= control target key start
LH: loop header
LB: loop body
LE: loop exit
PB: predicated region body
PF: predicated region fallthrough
CT: control target
= control target key end

     0   :  { %8 = vsyncpa [#allocation3], 0  ;;  %s1302_s0 = inlined_call_operand.hbm [shape: f32[128,256], index: 0, kind: input, shape index: {}]   ;;  %s1303_s1 = inlined_call_operand.hbm [shape: f32[256,384], index: 1, kind: input, shape index: {}]   ;;  %s1304_s2 = inlined_call_operand.vmem [shape: f32[1,384], index: 2, kind: input, shape index: {}]   ;;  %s1305_s3 = inlined_call_operand.hbm [shape: f32[128,384], index: 3, kind: output, shape index: {}]  }
   0x1   :  { %9 = vsyncpa [#allocation6], 0 }
   0x2   :  { %11 = vsyncpa [#allocation6 + $0x1], 0 }
   0x3   :  { %12 = vsyncpa [#allocation4], 0 }
   0x4   :  { %14 = vsyncpa [#allocation4 + $0x1], 0  ;;  %s1014_s12 = smov 0   ;;  %s1016_s13 = smov 0  }
   0x5   :  { %s1018_s14 = smov 0   ;;  %s1020_s15 = smov 0  }
   0x6   :  { %s1022_s16 = smov 0   ;;  %s1024_s17 = smov 0  }
   0x7 LB: > { %s612_s18 = sadd.s32 4294967295, %s981_s17   ;;  %s613_s19 = sadd.s32 4294967294, %s981_s17   ;;  %s981_s17 = sphi %s1024_s17, %s20_s17   ;;  %s977_s16 = sphi %s1022_s16, %s1330_s16   ;;  %s973_s15 = sphi %s1020_s15, %s1329_s15   ;;  %s969_s14 = sphi %s1018_s14, %s1328_s14   ;;  %s965_s13 = sphi %s1016_s13, %s1327_s13   ;;  %s961_s12 = sphi %s1014_s12, %s1326_s12  }
   0x8   : > { %p72_p0 = scmp.ne.s32.totalorder %s969_s14, %s965_s13  ;;  %p73_p1 = scmp.eq.s32.totalorder %s981_s17, 0 }
   0x9   : > { %p78_p2 = scmp.ne.s32.totalorder %s965_s13, %s961_s12  ;;  %p1051_p3 = scmp.eq.s32.totalorder %s612_s18, 0 }
   0xa   : > { %p1055_p4 = por %p73_p1, %p72_p0  ;;  %p130_p5 = scmp.eq.s32.totalorder %s612_s18, 2 }
   0xb   : > { %s1312_s20 = scalar_select %p1051_p3, 1, 0 }
   0xc   : > { %p1061_p6 = por %p1051_p3, %p78_p2  ;;  %p136_p7 = scmp.eq.s32.totalorder %s613_s19, 2 }
   0xd   : > { %p1065_p8 = por %p130_p5, %p72_p0  ;;  %p614_p9 = scmp.ge.s32.totalorder %s981_s17, 1 }
   0xe   : > { %s1314_s22 = scalar_select %p1061_p6, 1, 0 }
   0xf   : > { %s1315_s23 = scalar_select %p1065_p8, 1, 0 }
  0x10   : > { %p1070_p10 = por %p136_p7, %p78_p2  ;;  %p143_p11 = scmp.lt.s32.totalorder %s981_s17, 4 }
  0x11   : > { %s983_s26 = smov [#allocation2]   ;;  %p777_p0 = scmp.lt.s32.totalorder %s981_s17, 3 }
  0x12   : > { %s1316_s24 = scalar_select %p1070_p10, 1, 0 }
  0x13   : > { %p1075_p12 = pnand %p614_p9, %p143_p11  ;;  %s159_s27 = sshll.u32 %s983_s26, 4  ;;  %s160_s27 = int_to_ptr.vmem [resolvable:$true] %s159_s27 }
  0x14   : > { %p1090_p2 = pnand %p777_p0, %p1055_p4  ;;  %s29_s30 = sadd.s32 1, %s977_s16 }
  0x15   : > { %s1317_s25 = scalar_select %p1075_p12, 1, 0 }
  0x16   : > { %p764_p13 = pneg %p1075_p12  ;;  %s837_s6 = scalar_lea.hbm %s1302_s0, 4096 }
  0x17   : > { %s1319_s29 = scalar_select %p1090_p2, 1, 0 }
  0x18   : > { %p1084_p1 = pnand %p764_p13, %p1051_p3  ;;  %p838_p5 = scmp.ne.s32.totalorder %s1302_s0, %s837_s6 }
  0x19   : > { %p844_p4 = scmp.lt.u32.totalorder %s837_s6, %s1302_s0 }
  0x1a   : > { %p839_p7 = pneg %p1084_p1 }
  0x1c   : > { %p840_p9 = pnand %p839_p7, %p838_p5 }
  0x1e   : > { %p841_p11 = pneg %p840_p9 }
  0x20   : > { %p846_p13 = pnand %p844_p4, %p841_p11 }
  0x22   : > { %849 = shalt.err (!%p846_p13)
}
  0x23   : > { %s850_s11 = scalar_lea.vmem %s160_s27, 4096  ;;  %p858_p6 = scmp.lt.s32.totalorder %s160_s27, %s160_s27 }
  0x24   : > { %p851_p0 = scmp.ne.s32.totalorder %s160_s27, %s850_s11  ;;  %p859_p3 = scmp.lt.s32.totalorder %s850_s11, %s850_s11 }
  0x26   : > { %p853_p10 = pnand %p851_p0, %p839_p7  ;;  %p860_p12 = por %p859_p3, %p858_p6 }
  0x28   : > { %p854_p8 = pneg %p853_p10 }
  0x2a   : > { %p861_p2 = pnand %p860_p12, %p854_p8 }
  0x2c   : > { %864 = shalt.err (!%p861_p2)
}
  0x2d   : > { %s984_s18 = smov 256   ;;  %s985_s19 = smov 16  }
  0x2e   : > { %767 = dma.hbm_to_vmem [thread:$0]  (!%p1084_p1), %s1302_s0, 4096, %s160_s27, [#allocation3], %s984_s18, %s984_s18, %s985_s19  }
  0x2f   : > { %p30_p5 = scmp.ge.s32.totalorder %s29_s30, 3  ;;  %s65_s4 = sadd.s32 1, %s969_s14 }
  0x30   : > { %s173_s5 = sand.u32 1, %s969_s14   ;;  %s618_s8 = sshll.u32 %s977_s16, 7 }
  0x31   : > { %s1332_s30 = smov (%p30_p5, %s29_s30), 0  ;;  %s617_s6 = sshll.u32 %s173_s5, 8 }
  0x32   : > { %s62_s7 = ssub.s32 %s977_s16, %s1332_s30  ;;  %s1121_s28 = scalar_lea.hbm %s1303_s1, %s618_s8 }
  0x33   : > { %p63_p3 = scmp.eq.s32.totalorder %s62_s7, 0  ;;  %s177_s27 = scalar_lea.vmem [#allocation5], %s617_s6 }
  0x34   : > { %s183_s11 = sshll.u32 %s177_s27, 4  ;;  %s1128_s19 = scalar_lea.sflag [#allocation6], %s173_s5  ;;  %s1126_s11 = int_to_ptr.vmem [resolvable:$true] %s183_s11 }
  0x35   : > { %s1124_s18 = scalar_select %p63_p3, %s969_s14, %s65_s4  }
  0x36   : > { %s865_s21 = scalar_lea.hbm %s1121_s28, 4096  ;;  %p1320_p8 = scmp.ne.s32.totalorder %s1319_s29, 0 }
  0x37   : > { %p866_p6 = scmp.ne.s32.totalorder %s1121_s28, %s865_s21  ;;  %s870_s8 = scalar_lea.hbm %s1303_s1, 12288 }
  0x38   : > { %p867_p10 = pneg %p1320_p8  ;;  %p871_p2 = scmp.lt.u32.totalorder %s1121_s28, %s1303_s1 }
  0x39   : > { %p872_p7 = scmp.lt.u32.totalorder %s870_s8, %s865_s21  ;;  %p874_p11 = scmp.lt.u32.totalorder %s865_s21, %s1121_s28 }
  0x3a   : > { %p868_p12 = pnand %p867_p10, %p866_p6 }
  0x3b   : > { %p873_p9 = por %p872_p7, %p871_p2 }
  0x3c   : > { %p869_p1 = pneg %p868_p12 }
  0x3d   : > { %p875_p4 = por %p874_p11, %p873_p9 }
  0x3f   : > { %p876_p13 = pnand %p875_p4, %p869_p1 }
  0x41   : > { %879 = shalt.err (!%p876_p13)
}
  0x42   : > { %s880_s4 = scalar_lea.vmem %s1126_s11, 4096  ;;  %s986_s5 = smov [#allocation5]  }
  0x43   : > { %p881_p0 = scmp.ne.s32.totalorder %s1126_s11, %s880_s4  ;;  %s885_s10 = sshll.u32 %s986_s5, 4  ;;  %s886_s10 = int_to_ptr.vmem [resolvable:$false] %s885_s10 }
  0x44   : > { %s887_s27 = scalar_lea.vmem %s886_s10, 8192  ;;  %p888_p6 = scmp.lt.s32.totalorder %s1126_s11, %s886_s10 }
  0x45   : > { %p883_p5 = pnand %p881_p0, %p867_p10  ;;  %p889_p12 = scmp.lt.s32.totalorder %s887_s27, %s880_s4 }
  0x47   : > { %p884_p3 = pneg %p883_p5  ;;  %p890_p2 = por %p889_p12, %p888_p6 }
  0x49   : > { %p891_p7 = pnand %p890_p2, %p884_p3 }
  0x4b   : > { %894 = shalt.err (!%p891_p7)
}
  0x4c   : > { %s987_s21 = smov 384   ;;  %s988_s26 = smov 128  }
  0x4d   : > { %s989_s7 = smov 8   ;;  %p1321_p10 = scmp.ne.s32.totalorder %s1317_s25, 0 }
  0x4e   : > { %771 = dma.hbm_to_vmem [thread:$0]  (!%p1320_p8), %s1121_s28, 4096, %s1126_s11, %s1128_s19, %s987_s21, %s988_s26, %s989_s7  }
  0x4f   : > { %201 = sbr.rel (%p1321_p10) target bundleno = 389 (0x185), region = 32  ;;  %p1322_p1 = scmp.ne.s32.totalorder (!%p1321_p10), %s1312_s20, 0 }
  0x56   : > { %948 = dma.done.wait (%p1322_p1), [#allocation3], 4096  }
  0x57   : > { %950 = vsyncadd (%p1322_p1), [#allocation3], 4294963200  ;;  %s1163_s8 = sand.u32 1, %s965_s13   ;;  %p1323_p8 = scmp.ne.s32.totalorder %s1314_s22, 0 }
  0x58   : > { %s621_s6 = sshll.u32 %s1163_s8, 8  ;;  %s208_s9 = scalar_lea.sflag [#allocation6], %s1163_s8 }
  0x59   : > { %s1167_s4 = scalar_lea.vmem [#allocation5], %s621_s6 }
  0x5a   : > { %952 = dma.done.wait (%p1323_p8), %s208_s9, 4096  }
  0x5b   : > { %954 = vsyncadd (%p1323_p8), %s208_s9, 4294963200  ;;  %v290_v0 = vld [vmem:[%s1167_s4 + $0x80] sm:$0xff]  ;;  %v291_v1 = vld [vmem:[%s1167_s4 + $0x88] sm:$0xff]  ;;  %p238_p9 = scmp.lt.s32.totalorder %s973_s15, 2  ;;  %s622_s28 = sshll.u32 %s1163_s8, 7 }
  0x5c   : > { %v274_v2 = vld [vmem:[%s1167_s4] sm:$0xff]  ;;  %v708_v3 = vpack.c.bf16 %v291_v1, %v290_v0  ;;  %v275_v4 = vld [vmem:[%s1167_s4 + $0x8] sm:$0xff]  ;;  %v292_v5 = vld [vmem:[%s1167_s4 + $0x90] sm:$0xff]  ;;  %s1215_s11 = scalar_lea.vmem [#allocation7], %s622_s28  ;;  %s625_s19 = sshll.u32 %s973_s15, 7 }
  0x5d   : > { %v293_v6 = vld [vmem:[%s1167_s4 + $0x98] sm:$0xff]  ;;  %v710_v7 = vpack.c.bf16 %v275_v4, %v274_v2  ;;  %v276_v9 = vld [vmem:[%s1167_s4 + $0x10] sm:$0xff]  ;;  %v294_v11 = vld [vmem:[%s1167_s4 + $0xa0] sm:$0xff]  ;;  %s239_s20 = scalar_select %p238_p9, %s973_s15, 2 }
  0x5e   : > { %v712_v8 = vpack.c.bf16 %v293_v6, %v292_v5  ;;  %v277_v10 = vld [vmem:[%s1167_s4 + $0x18] sm:$0xff]  ;;  %709 = vmatprep.subr.bf16.mxu0 %v708_v3  ;;  %740 = vmatprep.subr.bf16.mxu1 %v708_v3  ;;  %v295_v12 = vld [vmem:[%s1167_s4 + $0xa8] sm:$0xff]  ;;  %v278_v15 = vld [vmem:[%s1167_s4 + $0x20] sm:$0xff]  ;;  %s506_s5 = sshll.u32 %s1215_s11, 4  ;;  %s1250_s21 = scalar_lea.hbm %s1305_s3, %s625_s19  ;;  %s1252_s5 = int_to_ptr.vmem [resolvable:$true] %s506_s5 }
  0x5f   : > { %711 = vmatpush3.bf16.msra.mxu0 %v710_v7  ;;  %748 = vmatpush3.bf16.msra.mxu1 %v710_v7  ;;  %v714_v13 = vpack.c.bf16 %v277_v10, %v276_v9  ;;  %v716_v14 = vpack.c.bf16 %v295_v12, %v294_v11  ;;  %v279_v16 = vld [vmem:[%s1167_s4 + $0x28] sm:$0xff]  ;;  %v296_v17 = vld [vmem:[%s1167_s4 + $0xb0] sm:$0xff]  ;;  %v297_v18 = vld [vmem:[%s1167_s4 + $0xb8] sm:$0xff]  ;;  %s240_s29 = scalar_lea.vmem %s1304_s2, %s239_s20  ;;  %s491_s15 = scalar_lea.sflag [#allocation4], %s1163_s8 }
  0x60   : > { %713 = vmatprep.subr.bf16.mxu0 %v712_v8  ;;  %741 = vmatprep.subr.bf16.mxu1 %v712_v8  ;;  %v718_v19 = vpack.c.bf16 %v279_v16, %v278_v15  ;;  %v720_v20 = vpack.c.bf16 %v297_v18, %v296_v17  ;;  %v280_v21 = vld [vmem:[%s1167_s4 + $0x30] sm:$0xff]  ;;  %v281_v22 = vld [vmem:[%s1167_s4 + $0x38] sm:$0xff]  ;;  %v298_v23 = vld [vmem:[%s1167_s4 + $0xc0] sm:$0xff]  ;;  %s895_s26 = scalar_lea.vmem %s1252_s5, 2048  ;;  %p1324_p4 = scmp.ne.s32.totalorder %s1315_s23, 0 }
  0x61   : > { %v299_v24 = vld [vmem:[%s1167_s4 + $0xc8] sm:$0xff]  ;;  %v722_v27 = vpack.c.bf16 %v281_v22, %v280_v21  ;;  %v282_v29 = vld [vmem:[%s1167_s4 + $0x40] sm:$0xff]  ;;  %v300_v31 = vld [vmem:[%s1167_s4 + $0xd0] sm:$0xff]  ;;  %p896_p11 = scmp.ne.s32.totalorder %s1252_s5, %s895_s26  ;;  %s990_s7 = smov [#allocation7]  }
  0x62   : > { %v243_v25 = vld [vmem:[#allocation2 + $0x8] sm:$0xff]  ;;  %v724_v28 = vpack.c.bf16 %v299_v24, %v298_v23  ;;  %v301_v32 = vld [vmem:[%s1167_s4 + $0xd8] sm:$0xff]  ;;  %v284_v35 = vld [vmem:[%s1167_s4 + $0x50] sm:$0xff]  ;;  %s899_s6 = sshll.u32 %s990_s7, 4  ;;  %s900_s6 = int_to_ptr.vmem [resolvable:$false] %s899_s6 }
  0x63   : > { %715 = vmatpush3.bf16.msra.mxu0 %v714_v13  ;;  %749 = vmatpush3.bf16.msra.mxu1 %v714_v13  ;;  %v259_v26 = vld [vmem:[#allocation2 + $0x88] sm:$0xff]  ;;  %v728_v34 = vpack.c.bf16 %v301_v32, %v300_v31  ;;  %v285_v36 = vld [vmem:[%s1167_s4 + $0x58] sm:$0xff]  ;;  %v302_v37 = vld [vmem:[%s1167_s4 + $0xe0] sm:$0xff]  ;;  %p897_p13 = pnand %p896_p11, %p1324_p4  ;;  %s901_s9 = scalar_lea.vmem %s900_s6, 4096 }
  0x64   : > { %717 = vmatprep.subr.bf16.mxu0 %v716_v14  ;;  %742 = vmatprep.subr.bf16.mxu1 %v716_v14  ;;  %v283_v30 = vld [vmem:[%s1167_s4 + $0x48] sm:$0xff]  ;;  %v730_v39 = vpack.c.bf16 %v285_v36, %v284_v35  ;;  %v286_v41 = vld [vmem:[%s1167_s4 + $0x60] sm:$0xff]  ;;  %v304_v43 = vld [vmem:[%s1167_s4 + $0xf0] sm:$0xff]  ;;  %p902_p5 = scmp.lt.s32.totalorder %s1252_s5, %s900_s6  ;;  %p903_p3 = scmp.lt.s32.totalorder %s901_s9, %s895_s26 }
  0x65   : > { %377 = vmatprep.mubr.f32.mxu0 %v243_v25  ;;  %417 = vmatprep.mubr.f32.mxu1 %v259_v26  ;;  %v726_v33 = vpack.c.bf16 %v283_v30, %v282_v29  ;;  %v303_v38 = vld [vmem:[%s1167_s4 + $0xe8] sm:$0xff]  ;;  %v305_v44 = vld [vmem:[%s1167_s4 + $0xf8] sm:$0xff]  ;;  %v288_v47 = vld [vmem:[%s1167_s4 + $0x70] sm:$0xff]  ;;  %p898_p0 = pneg %p897_p13 }
  0x66   : > { %v732_v40 = vpack.c.bf16 %v303_v38, %v302_v37  ;;  %v287_v42 = vld [vmem:[%s1167_s4 + $0x68] sm:$0xff]  ;;  %v736_v46 = vpack.c.bf16 %v305_v44, %v304_v43  ;;  %v289_v48 = vld [vmem:[%s1167_s4 + $0x78] sm:$0xff]  ;;  %v242_v50 = vld [vmem:[#allocation2] sm:$0xff]  ;;  %p904_p6 = por %p903_p3, %p902_p5 }
  0x67   : > { %719 = vmatpush3.bf16.msra.mxu0 %v718_v19  ;;  %750 = vmatpush3.bf16.msra.mxu1 %v718_v19  ;;  %v734_v45 = vpack.c.bf16 %v287_v42, %v286_v41  ;;  %v738_v49 = vpack.c.bf16 %v289_v48, %v288_v47  ;;  %v258_v51 = vld [vmem:[#allocation2 + $0x80] sm:$0xff]  ;;  %v245_v52 = vld [vmem:[#allocation2 + $0x18] sm:$0xff]  ;;  %v244_v54 = vld [vmem:[#allocation2 + $0x10] sm:$0xff] }
  0x68   : > { %721 = vmatprep.subr.bf16.mxu0 %v720_v20  ;;  %743 = vmatprep.subr.bf16.mxu1 %v720_v20  ;;  %v261_v53 = vld [vmem:[#allocation2 + $0x98] sm:$0xff]  ;;  %v260_v55 = vld [vmem:[#allocation2 + $0x90] sm:$0xff]  ;;  %v247_v56 = vld [vmem:[#allocation2 + $0x28] sm:$0xff]  ;;  %p905_p12 = pnand %p904_p6, %p898_p0 }
  0x69   : > { %v263_v57 = vld [vmem:[#allocation2 + $0xa8] sm:$0xff]  ;;  %v246_v58 = vld [vmem:[#allocation2 + $0x20] sm:$0xff]  ;;  %v249_v60 = vld [vmem:[#allocation2 + $0x38] sm:$0xff] }
  0x6a   : > { %v262_v59 = vld [vmem:[#allocation2 + $0xa0] sm:$0xff]  ;;  %v265_v61 = vld [vmem:[#allocation2 + $0xb8] sm:$0xff]  ;;  %v248_v62 = vld [vmem:[#allocation2 + $0x30] sm:$0xff] }
  0x6b   : > { %723 = vmatpush3.bf16.msra.mxu0 %v722_v27  ;;  %751 = vmatpush3.bf16.msra.mxu1 %v722_v27  ;;  %v264_v63 = vld [vmem:[#allocation2 + $0xb0] sm:$0xff]  ;;  %v251_v0 = vld [vmem:[#allocation2 + $0x48] sm:$0xff]  ;;  %v250_v2 = vld [vmem:[#allocation2 + $0x40] sm:$0xff] }
  0x6c   : > { %725 = vmatprep.subr.bf16.mxu0 %v724_v28  ;;  %744 = vmatprep.subr.bf16.mxu1 %v724_v28  ;;  %v267_v1 = vld [vmem:[#allocation2 + $0xc8] sm:$0xff]  ;;  %v266_v3 = vld [vmem:[#allocation2 + $0xc0] sm:$0xff]  ;;  %v253_v4 = vld [vmem:[#allocation2 + $0x58] sm:$0xff] }
  0x6d   : > { %v269_v5 = vld [vmem:[#allocation2 + $0xd8] sm:$0xff]  ;;  %v252_v6 = vld [vmem:[#allocation2 + $0x50] sm:$0xff]  ;;  %v255_v8 = vld [vmem:[#allocation2 + $0x68] sm:$0xff] }
  0x6e   : > { %v268_v7 = vld [vmem:[#allocation2 + $0xd0] sm:$0xff]  ;;  %v271_v9 = vld [vmem:[#allocation2 + $0xe8] sm:$0xff]  ;;  %v254_v10 = vld [vmem:[#allocation2 + $0x60] sm:$0xff] }
  0x6f   : > { %727 = vmatpush3.bf16.msra.mxu0 %v726_v33  ;;  %752 = vmatpush3.bf16.msra.mxu1 %v726_v33  ;;  %v270_v11 = vld [vmem:[#allocation2 + $0xe0] sm:$0xff]  ;;  %v257_v12 = vld [vmem:[#allocation2 + $0x78] sm:$0xff]  ;;  %v256_v14 = vld [vmem:[#allocation2 + $0x70] sm:$0xff] }
  0x70   : > { %729 = vmatprep.subr.bf16.mxu0 %v728_v34  ;;  %745 = vmatprep.subr.bf16.mxu1 %v728_v34  ;;  %v273_v13 = vld [vmem:[#allocation2 + $0xf8] sm:$0xff]  ;;  %v272_v15 = vld [vmem:[#allocation2 + $0xf0] sm:$0xff]  ;;  %v1210_v18 = vld [vmem:[%s240_s29] ss:$0 sm:$0xff] }
  0x73   : > { %731 = vmatpush3.bf16.msra.mxu0 %v730_v39  ;;  %753 = vmatpush3.bf16.msra.mxu1 %v730_v39 }
  0x74   : > { %733 = vmatprep.subr.bf16.mxu0 %v732_v40  ;;  %746 = vmatprep.subr.bf16.mxu1 %v732_v40 }
  0x77   : > { %735 = vmatpush3.bf16.msra.mxu0 %v734_v45  ;;  %754 = vmatpush3.bf16.msra.mxu1 %v734_v45 }
  0x78   : > { %737 = vmatprep.subr.bf16.mxu0 %v736_v46  ;;  %747 = vmatprep.subr.bf16.mxu1 %v736_v46 }
  0x7b   : > { %739 = vmatpush3.bf16.msra.mxu0 %v738_v49  ;;  %755 = vmatpush3.bf16.msra.mxu1 %v738_v49 }
  0x7e   : > { %378 = vmatmul.mubr.f32.vlgmr.msra.gmra.mrb[0].mxu0 %v242_v50  ;;  %418 = vmatmul.mubr.f32.vlgmr.msra.gmra.mrb[0].mxu1 %v258_v51 }
  0x7f   : > { %382 = vmatprep.mubr.f32.mxu0 %v245_v52  ;;  %422 = vmatprep.mubr.f32.mxu1 %v261_v53 }
  0x82   : > { %383 = vmatmul.mubr.f32.gmra.mrb[2].mxu0 %v244_v54  ;;  %423 = vmatmul.mubr.f32.gmra.mrb[2].mxu1 %v260_v55 }
  0x83   : > { %387 = vmatprep.mubr.f32.mxu0 %v247_v56  ;;  %427 = vmatprep.mubr.f32.mxu1 %v263_v57 }
  0x86   : > { %388 = vmatmul.mubr.f32.gmra.mrb[4].mxu0 %v246_v58  ;;  %428 = vmatmul.mubr.f32.gmra.mrb[4].mxu1 %v262_v59 }
  0x87   : > { %392 = vmatprep.mubr.f32.mxu0 %v249_v60  ;;  %432 = vmatprep.mubr.f32.mxu1 %v265_v61 }
  0x8a   : > { %393 = vmatmul.mubr.f32.gmra.mrb[6].mxu0 %v248_v62  ;;  %433 = vmatmul.mubr.f32.gmra.mrb[6].mxu1 %v264_v63 }
  0x8b   : > { %397 = vmatprep.mubr.f32.mxu0 %v251_v0  ;;  %437 = vmatprep.mubr.f32.mxu1 %v267_v1 }
  0x8e   : > { %398 = vmatmul.mubr.f32.gmra.mrb[8].mxu0 %v250_v2  ;;  %438 = vmatmul.mubr.f32.gmra.mrb[8].mxu1 %v266_v3 }
  0x8f   : > { %402 = vmatprep.mubr.f32.mxu0 %v253_v4  ;;  %442 = vmatprep.mubr.f32.mxu1 %v269_v5 }
  0x92   : > { %403 = vmatmul.mubr.f32.gmra.mrb[10].mxu0 %v252_v6  ;;  %443 = vmatmul.mubr.f32.gmra.mrb[10].mxu1 %v268_v7 }
  0x93   : > { %407 = vmatprep.mubr.f32.mxu0 %v255_v8  ;;  %447 = vmatprep.mubr.f32.mxu1 %v271_v9 }
  0x96   : > { %408 = vmatmul.mubr.f32.gmra.mrb[12].mxu0 %v254_v10  ;;  %448 = vmatmul.mubr.f32.gmra.mrb[12].mxu1 %v270_v11 }
  0x97   : > { %412 = vmatprep.mubr.f32.mxu0 %v257_v12  ;;  %452 = vmatprep.mubr.f32.mxu1 %v273_v13 }
  0x9a   : > { %413 = vmatmul.mubr.f32.gmra.mrb[14].mxu0 %v256_v14  ;;  %453 = vmatmul.mubr.f32.gmra.mrb[14].mxu1 %v272_v15 }
 0x151   : > { %v660_v16 = vpop.f32.mrb[0].mxu0  ;;  %v684_v17 = vpop.f32.mrb[0].mxu1 }
 0x152   : > { %v661_v19 = vpop.f32.mrb[1].mxu0  ;;  %v685_v20 = vpop.f32.mrb[1].mxu1 }
 0x153   : > { %v662_v21 = vadd.f32 %v661_v19, %v660_v16  ;;  %v686_v22 = vadd.f32 %v685_v20, %v684_v17 }
 0x155   : > { %v380_v23 = vadd.f32 %v662_v21, %v1210_v18  ;;  %v420_v24 = vadd.f32 %v686_v22, %v1210_v18  ;;  %v663_v25 = vpop.f32.mrb[2].mxu0  ;;  %v687_v26 = vpop.f32.mrb[2].mxu1 }
 0x156   : > { %v664_v27 = vpop.f32.mrb[3].mxu0  ;;  %v688_v28 = vpop.f32.mrb[3].mxu1 }
 0x157   : > { %v458_v29 = vmax.f32 %v380_v23, 0.0  ;;  %v466_v30 = vmax.f32 %v420_v24, 0.0  ;;  %v665_v31 = vadd.f32 %v664_v27, %v663_v25  ;;  %v689_v32 = vadd.f32 %v688_v28, %v687_v26 }
 0x159   : > { %474 = vst [vmem:[%s1215_s11] sm:$0xff] %v458_v29  ;;  %482 = vst [vmem:[%s1215_s11 + $0x40] sm:$0xff] %v466_v30  ;;  %v385_v33 = vadd.f32 %v665_v31, %v1210_v18  ;;  %v425_v34 = vadd.f32 %v689_v32, %v1210_v18  ;;  %v666_v35 = vpop.f32.mrb[4].mxu0  ;;  %v690_v36 = vpop.f32.mrb[4].mxu1 }
 0x15a   : > { %v667_v37 = vpop.f32.mrb[5].mxu0  ;;  %v691_v38 = vpop.f32.mrb[5].mxu1 }
 0x15b   : > { %v459_v39 = vmax.f32 %v385_v33, 0.0  ;;  %v467_v40 = vmax.f32 %v425_v34, 0.0  ;;  %v668_v41 = vadd.f32 %v667_v37, %v666_v35  ;;  %v692_v42 = vadd.f32 %v691_v38, %v690_v36 }
 0x15d   : > { %475 = vst [vmem:[%s1215_s11 + $0x8] sm:$0xff] %v459_v39  ;;  %483 = vst [vmem:[%s1215_s11 + $0x48] sm:$0xff] %v467_v40  ;;  %v390_v43 = vadd.f32 %v668_v41, %v1210_v18  ;;  %v430_v44 = vadd.f32 %v692_v42, %v1210_v18  ;;  %v669_v45 = vpop.f32.mrb[6].mxu0  ;;  %v693_v46 = vpop.f32.mrb[6].mxu1 }
 0x15e   : > { %v670_v47 = vpop.f32.mrb[7].mxu0  ;;  %v694_v48 = vpop.f32.mrb[7].mxu1 }
 0x15f   : > { %v460_v49 = vmax.f32 %v390_v43, 0.0  ;;  %v468_v50 = vmax.f32 %v430_v44, 0.0  ;;  %v671_v51 = vadd.f32 %v670_v47, %v669_v45  ;;  %v695_v52 = vadd.f32 %v694_v48, %v693_v46 }
 0x161   : > { %476 = vst [vmem:[%s1215_s11 + $0x10] sm:$0xff] %v460_v49  ;;  %484 = vst [vmem:[%s1215_s11 + $0x50] sm:$0xff] %v468_v50  ;;  %v395_v53 = vadd.f32 %v671_v51, %v1210_v18  ;;  %v435_v54 = vadd.f32 %v695_v52, %v1210_v18  ;;  %v672_v55 = vpop.f32.mrb[8].mxu0  ;;  %v696_v56 = vpop.f32.mrb[8].mxu1 }
 0x162   : > { %v673_v57 = vpop.f32.mrb[9].mxu0  ;;  %v697_v58 = vpop.f32.mrb[9].mxu1 }
 0x163   : > { %v461_v59 = vmax.f32 %v395_v53, 0.0  ;;  %v469_v60 = vmax.f32 %v435_v54, 0.0  ;;  %v674_v61 = vadd.f32 %v673_v57, %v672_v55  ;;  %v698_v62 = vadd.f32 %v697_v58, %v696_v56 }
 0x165   : > { %477 = vst [vmem:[%s1215_s11 + $0x18] sm:$0xff] %v461_v59  ;;  %485 = vst [vmem:[%s1215_s11 + $0x58] sm:$0xff] %v469_v60  ;;  %v400_v63 = vadd.f32 %v674_v61, %v1210_v18  ;;  %v440_v0 = vadd.f32 %v698_v62, %v1210_v18  ;;  %v675_v1 = vpop.f32.mrb[10].mxu0  ;;  %v699_v2 = vpop.f32.mrb[10].mxu1 }
 0x166   : > { %v676_v3 = vpop.f32.mrb[11].mxu0  ;;  %v700_v4 = vpop.f32.mrb[11].mxu1 }
 0x167   : > { %v462_v5 = vmax.f32 %v400_v63, 0.0  ;;  %v470_v6 = vmax.f32 %v440_v0, 0.0  ;;  %v677_v7 = vadd.f32 %v676_v3, %v675_v1  ;;  %v701_v8 = vadd.f32 %v700_v4, %v699_v2 }
 0x169   : > { %478 = vst [vmem:[%s1215_s11 + $0x20] sm:$0xff] %v462_v5  ;;  %486 = vst [vmem:[%s1215_s11 + $0x60] sm:$0xff] %v470_v6  ;;  %v405_v9 = vadd.f32 %v677_v7, %v1210_v18  ;;  %v445_v10 = vadd.f32 %v701_v8, %v1210_v18  ;;  %v678_v11 = vpop.f32.mrb[12].mxu0  ;;  %v702_v12 = vpop.f32.mrb[12].mxu1 }
 0x16a   : > { %v679_v13 = vpop.f32.mrb[13].mxu0  ;;  %v703_v14 = vpop.f32.mrb[13].mxu1 }
 0x16b   : > { %v463_v15 = vmax.f32 %v405_v9, 0.0  ;;  %v471_v16 = vmax.f32 %v445_v10, 0.0  ;;  %v680_v17 = vadd.f32 %v679_v13, %v678_v11  ;;  %v704_v19 = vadd.f32 %v703_v14, %v702_v12 }
 0x16d   : > { %479 = vst [vmem:[%s1215_s11 + $0x28] sm:$0xff] %v463_v15  ;;  %487 = vst [vmem:[%s1215_s11 + $0x68] sm:$0xff] %v471_v16  ;;  %v410_v20 = vadd.f32 %v680_v17, %v1210_v18  ;;  %v450_v21 = vadd.f32 %v704_v19, %v1210_v18  ;;  %v681_v22 = vpop.f32.mrb[14].mxu0  ;;  %v705_v23 = vpop.f32.mrb[14].mxu1 }
 0x16e   : > { %v682_v24 = vpop.f32.mrb[15].mxu0  ;;  %v706_v25 = vpop.f32.mrb[15].mxu1 }
 0x16f   : > { %v464_v26 = vmax.f32 %v410_v20, 0.0  ;;  %v472_v27 = vmax.f32 %v450_v21, 0.0  ;;  %v683_v28 = vadd.f32 %v682_v24, %v681_v22  ;;  %v707_v29 = vadd.f32 %v706_v25, %v705_v23 }
 0x171   : > { %480 = vst [vmem:[%s1215_s11 + $0x30] sm:$0xff] %v464_v26  ;;  %488 = vst [vmem:[%s1215_s11 + $0x70] sm:$0xff] %v472_v27  ;;  %v415_v30 = vadd.f32 %v683_v28, %v1210_v18  ;;  %v455_v31 = vadd.f32 %v707_v29, %v1210_v18 }
 0x173   : > { %v465_v32 = vmax.f32 %v415_v30, 0.0  ;;  %v473_v33 = vmax.f32 %v455_v31, 0.0 }
 0x175   : > { %481 = vst [vmem:[%s1215_s11 + $0x38] sm:$0xff] %v465_v32  ;;  %489 = vst [vmem:[%s1215_s11 + $0x78] sm:$0xff] %v473_v33 }
 0x176   : > { %908 = shalt.err (!%p905_p12)
}
 0x177   : > { %s909_s4 = scalar_lea.hbm %s1250_s21, 2048  ;;  %s913_s25 = scalar_lea.hbm %s1305_s3, 6144 }
 0x178   : > { %p910_p2 = scmp.ne.s32.totalorder %s1250_s21, %s909_s4  ;;  %p914_p1 = scmp.lt.u32.totalorder %s1250_s21, %s1305_s3 }
 0x179   : > { %p915_p8 = scmp.lt.u32.totalorder %s913_s25, %s909_s4  ;;  %p917_p11 = scmp.lt.u32.totalorder %s909_s4, %s1250_s21 }
 0x17a   : > { %p911_p7 = pnand %p910_p2, %p1324_p4 }
 0x17b   : > { %p916_p9 = por %p915_p8, %p914_p1 }
 0x17c   : > { %p912_p10 = pneg %p911_p7 }
 0x17d   : > { %p918_p13 = por %p917_p11, %p916_p9 }
 0x17f   : > { %p919_p0 = pnand %p918_p13, %p912_p10 }
 0x181   : > { %922 = shalt.err (!%p919_p0)
}
 0x182   : > { %s991_s11 = smov 128   ;;  %s992_s19 = smov 384  }
 0x183   : > { %s993_s10 = smov 8  }
 0x184   : > { %762 = dma.vmem_to_hbm [thread:$0]  (%p1324_p4), %s1252_s5, 2048, %s1250_s21, %s491_s15, %s991_s11, %s992_s19, %s993_s10  }
 0x185 PF: > { %p779_p5 = scmp.ge.s32.totalorder %s981_s17, 2  ;;  %s521_s27 = sand.u32 1, %s961_s12  }
 0x186   : > { %p1325_p3 = scmp.ne.s32.totalorder %s1316_s24, 0  ;;  %s522_s26 = scalar_lea.sflag [#allocation4], %s521_s27 }
 0x188   : > { %p773_p6 = pnand %p779_p5, %p1325_p3 }
 0x18a   : > { %956 = dma.done.wait (!%p773_p6), %s522_s26, 2048  }
 0x18b   : > { %958 = vsyncadd (!%p773_p6), %s522_s26, 4294965248  ;;  %s20_s17 = sadd.s32 1, %s981_s17   ;;  %s1326_s12 = smov %s965_s13 }
 0x18c   : > { %p17_p12 = scmp.ge.s32.totalorder %s20_s17, 5   ;;  %s1327_s13 = smov %s969_s14 }
 0x18d   : > { %s1328_s14 = smov %s1124_s18  ;;  %s1329_s15 = smov %s977_s16 }
 0x18e   : > { %s1330_s16 = smov %s1332_s30  ;;  %19 = sbr.rel (!%p17_p12) target bundleno = 7 (0x7), region = 86 }
 0x195   :  { %527 = vsyncpa [#allocation3], 1 }
 0x196   :  { %529 = vsyncpa [#allocation3 + $0x1], 1 }
 0x197   :  { %530 = vsyncpa [#allocation6], 1 }
 0x198   :  { %532 = vsyncpa [#allocation6 + $0x1], 1 }
 0x199   :  { %533 = vsyncpa [#allocation4], 1 }
 0x19a   :  { %535 = vsyncpa [#allocation4 + $0x1], 1 }

</bundles_post_ra>
